<compile_context>
chip_gen: v7x
topology: tpu7x:2x2x1
jax: 0.10.0
libtpu: 0.0.40
codegen_flags: <defaults>
</compile_context>

<pallas_src>
import jax
import jax.numpy as jnp
from jax.experimental import pallas as pl
from jax.experimental.pallas import tpu as pltpu


def _shallow_nn_kernel(prem_ref, hyp_ref, w1a_ref, w1b_ref, b1_ref, w2_ref,
                       b2_ref, out_ref, pmax_ref, hmax_ref):
    """Grid = (batch tiles, seq chunks).

    prem_ref / hyp_ref : [TB, TS, E]  streamed activation tiles (bf16 or f32)
    w1a_ref / w1b_ref  : [E, H] f32   resident halves of the 2E->H weight
    b1_ref             : [1, H] f32
    w2_ref             : [1, H] f32   prediction-layer weight as a row
    b2_ref             : [1, 1] f32
    out_ref            : [TB, 1] or [1, TB]
    pmax_ref/hmax_ref  : [TB, E] f32  running seq-max scratch
    """
    s = pl.program_id(1)

    @pl.when(s == 0)
    def _init():
        pmax_ref[...] = jnp.full(pmax_ref.shape, -jnp.inf, jnp.float32)
        hmax_ref[...] = jnp.full(hmax_ref.shape, -jnp.inf, jnp.float32)

    # Running max over sequence chunks (axis=1 of the tile).  Upcast to f32
    # before the reduce so the same code lowers on v5e (no bf16 VPU).
    pmax_ref[...] = jnp.maximum(
        pmax_ref[...], jnp.max(prem_ref[...].astype(jnp.float32), axis=1))
    hmax_ref[...] = jnp.maximum(
        hmax_ref[...], jnp.max(hyp_ref[...].astype(jnp.float32), axis=1))

    @pl.when(s == pl.num_programs(1) - 1)
    def _epilogue():
        # Linear(2E -> H), concat-free: concat([p, h]) @ w1 == p@w1a + h@w1b.
        ff = (jnp.dot(pmax_ref[...], w1a_ref[...],
                      preferred_element_type=jnp.float32)
              + jnp.dot(hmax_ref[...], w1b_ref[...],
                        preferred_element_type=jnp.float32)
              + b1_ref[...])
        ff = jnp.maximum(ff, 0.0)                                   # ReLU
        # Linear(H -> 1) on the VPU: multiply + lane reduction, then sigmoid.
        pred = jnp.sum(ff * w2_ref[...], axis=-1, keepdims=True) + b2_ref[...]
        prob = jax.nn.sigmoid(pred)                                 # [TB, 1]
        if out_ref.shape[0] == 1:            # lane-dense (1, TB) output
            out_ref[...] = prob.reshape(1, -1)
        else:                                # (TB, 1) output
            out_ref[...] = prob


def _vmem_budget_bytes():
    """~72% of physical VMEM: ~92 MiB on v5e/v6e (128 MiB), ~46 MiB on v7x."""
    phys = 64 * 1024 * 1024      # conservative fallback (v7x per-TC VMEM)
    try:
        info = pltpu.get_tpu_info()
        phys = int(getattr(info, "vmem_capacity_bytes", phys))
    except Exception:
        pass
    return min(int(phys * 0.72), 100 * 1024 * 1024)


def _pick_tiles(B, S, E, act_itemsize, act_budget_bytes, seq_pack):
    """Largest (tb, ts) whose double-buffered activation tiles fit the budget,
    keeping >= 2 batch tiles whenever B permits (v7x megacore)."""
    def divisors(n, opts):
        return [o for o in opts if o <= n and n % o == 0]

    tb_opts = divisors(B, (1024, 512, 256, 128, 64, 32, 16, 8)) or [B]
    ts_opts = [S] + [t for t in divisors(
        S, (8192, 4096, 2048, 1024, 512, 256, 128, 64, 32, 16))
        if t % seq_pack == 0 and t != S]
    can_split_batch = any(B // t >= 2 for t in tb_opts)

    best = None
    for tb in tb_opts:
        if can_split_batch and B // tb < 2:
            continue      # keep >= 2 batch tiles so both v7x TCs get work
        for ts in ts_opts:
            need = 2 * 2 * tb * ts * E * act_itemsize   # 2 inputs x 2 buffers
            if need > act_budget_bytes:
                continue
            if best is None or tb * ts > best[0] * best[1]:
                best = (tb, ts)
    if best is None:
        best = (tb_opts[-1], min(ts_opts))
    return best


def shallow_nn_forward(premise, hypothesis, emb_table, w1, b1, w2, b2,
                       *, tb=None, ts=None, act_dtype=jnp.bfloat16):
    """premise/hypothesis: int32 [B, S]; emb_table: [V, E] float32;
    w1: [2E, H] (pre-transposed, i.e. x @ w1), b1: [H]; w2: [H, 1]; b2: [1].
    Returns float32 [B] of sigmoid probabilities."""
    B, S = premise.shape
    V, E = emb_table.shape
    H = w1.shape[1]
    assert w1.shape[0] == 2 * E and hypothesis.shape == (B, S)

    act_itemsize = jnp.dtype(act_dtype).itemsize
    seq_pack = 32 // act_itemsize          # 8 rows/vreg f32, 16 for bf16

    # Embedding gather stays in XLA but streams narrow (bf16) activations,
    # halving the kernel's HBM read bytes vs f32.  (See TODO(synk) above.)
    emb_stream = emb_table.astype(act_dtype)
    prem_emb = jnp.take(emb_stream, premise, axis=0)      # [B, S, E]
    hyp_emb = jnp.take(emb_stream, hypothesis, axis=0)    # [B, S, E]

    vmem_budget = _vmem_budget_bytes()
    # Reserve room for resident weights, scratch and output before sizing the
    # streamed tiles.
    reserve = 4 * (2 * E * H + 2 * H + 1) * 4 + 2 * 1024 * 1024
    auto_tb, auto_ts = _pick_tiles(B, S, E, act_itemsize,
                                   max(vmem_budget - reserve, 1 << 20),
                                   seq_pack)
    if tb is None:
        tb = auto_tb
    if ts is None:
        ts = auto_ts

    assert B % tb == 0 and S % ts == 0, "tile sizes must divide (B, S)"
    assert tb == B or tb % 8 == 0, "tb must be a multiple of 8 (or == B)"
    assert ts == S or ts % seq_pack == 0, (
        f"ts must be a multiple of {seq_pack} for "
        f"{jnp.dtype(act_dtype).name} tiles (or == S)")

    # Split the first linear so no in-kernel concat is needed.
    w1a = w1[:E].astype(jnp.float32)                 # [E, H] premise half
    w1b = w1[E:].astype(jnp.float32)                 # [E, H] hypothesis half
    b1_2d = b1.reshape(1, H).astype(jnp.float32)     # [1, H]
    w2_row = w2.reshape(1, H).astype(jnp.float32)    # [1, H]
    b2_2d = b2.reshape(1, 1).astype(jnp.float32)     # [1, 1]

    grid = (B // tb, S // ts)                        # (batch tiles, seq chunks)

    act_spec = lambda: pl.BlockSpec((tb, ts, E), lambda b, s: (b, s, 0))
    resident = lambda shape: pl.BlockSpec(shape, lambda b, s: (0, 0))

    # Lane-dense output whenever the (8,128)/full-dim rule allows it.
    lane_dense = (tb == B) or (tb % 128 == 0)
    if lane_dense:
        out_shape = jax.ShapeDtypeStruct((1, B), jnp.float32)
        out_spec = pl.BlockSpec((1, tb), lambda b, s: (0, b))
    else:
        out_shape = jax.ShapeDtypeStruct((B, 1), jnp.float32)
        out_spec = pl.BlockSpec((tb, 1), lambda b, s: (b, 0))

    out = pl.pallas_call(
        _shallow_nn_kernel,
        out_shape=out_shape,
        grid_spec=pltpu.PrefetchScalarGridSpec(
            num_scalar_prefetch=0,
            grid=grid,
            in_specs=[
                act_spec(),                # premise activations
                act_spec(),                # hypothesis activations
                resident((E, H)),          # w1a
                resident((E, H)),          # w1b
                resident((1, H)),          # b1
                resident((1, H)),          # w2 row
                resident((1, 1)),          # b2
            ],
            out_specs=out_spec,
            scratch_shapes=[
                pltpu.VMEM((tb, E), jnp.float32),   # running max (premise)
                pltpu.VMEM((tb, E), jnp.float32),   # running max (hypothesis)
            ],
        ),
        compiler_params=pltpu.CompilerParams(
            # batch tiles independent -> split across TCs (v7x); seq chunks
            # carry the running-max accumulator -> arbitrary (sequential).
            dimension_semantics=("parallel", "arbitrary"),
            vmem_limit_bytes=vmem_budget,
        ),
    )(prem_emb, hyp_emb, w1a, w1b, b1_2d, w2_row, b2_2d)

    return out.reshape(-1)   # prob.view(-1)


def _reference_forward(premise, hypothesis, emb_table, w1, b1, w2, b2):
    prem = jnp.max(jnp.take(emb_table, premise, axis=0), axis=1)
    hyp = jnp.max(jnp.take(emb_table, hypothesis, axis=0), axis=1)
    concat = jnp.concatenate([prem, hyp], axis=1)
    ff = jnp.maximum(concat @ w1 + b1, 0.0)
    pred = ff @ w2 + b2
    return jax.nn.sigmoid(pred).reshape(-1)


if __name__ == "__main__":
    # Small deterministic setup: vocab=64, embedding_dim=16, hidden=32,
    # batch=16, seq=32.
    V, E, H = 64, 16, 32
    B, S = 16, 32

    key = jax.random.PRNGKey(0)
    k_emb, k_w1, k_b1, k_w2, k_b2, k_p, k_h = jax.random.split(key, 7)

    emb_table = jax.random.normal(k_emb, (V, E), dtype=jnp.float32)
    # PyTorch Linear stores weight [out, in]; we pass [in, out] (pre-transposed).
    w1 = jax.random.normal(k_w1, (2 * E, H), dtype=jnp.float32) * 0.1
    b1 = jax.random.normal(k_b1, (H,), dtype=jnp.float32) * 0.1
    w2 = jax.random.normal(k_w2, (H, 1), dtype=jnp.float32) * 0.1
    b2 = jax.random.normal(k_b2, (1,), dtype=jnp.float32) * 0.1

    premise = jax.random.randint(k_p, (B, S), 0, V, dtype=jnp.int32)
    hypothesis = jax.random.randint(k_h, (B, S), 0, V, dtype=jnp.int32)

    # f32 module reference (loose check) and a reference using the same
    # bf16-rounded embedding stream as the kernel (tight check).
    ref_f32 = _reference_forward(premise, hypothesis, emb_table, w1, b1, w2, b2)
    emb_bf16 = emb_table.astype(jnp.bfloat16).astype(jnp.float32)
    ref_bf16 = _reference_forward(premise, hypothesis, emb_bf16, w1, b1, w2, b2)

    configs = [
        dict(tb=8, ts=16),   # (B,1) out layout, grid (2,2): multi-chunk max
        dict(tb=B, ts=S),    # lane-dense (1,B) out layout, grid (1,1)
        dict(),              # auto tile selection from the VMEM budget
    ]
    for cfg in configs:
        prob = shallow_nn_forward(premise, hypothesis, emb_table,
                                  w1, b1, w2, b2, **cfg)
        prob = jax.block_until_ready(prob)
        assert prob.shape == (B,)
        assert jnp.allclose(prob, ref_bf16, atol=2e-3, rtol=2e-3), cfg
        assert jnp.allclose(prob, ref_f32, atol=5e-2, rtol=5e-2), cfg

    print("KERNEL_OK")
</pallas_src>

<mosaic_0001>
module attributes {stable_mosaic.version = 11 : i64} {
  func.func @_shallow_nn_kernel(%arg0: i32, %arg1: i32, %arg2: memref<8x16x16xbf16, #tpu.memory_space<vmem>>, %arg3: memref<8x16x16xbf16, #tpu.memory_space<vmem>>, %arg4: memref<16x32xf32, #tpu.memory_space<vmem>>, %arg5: memref<16x32xf32, #tpu.memory_space<vmem>>, %arg6: memref<1x32xf32, #tpu.memory_space<vmem>>, %arg7: memref<1x32xf32, #tpu.memory_space<vmem>>, %arg8: memref<1x1xf32, #tpu.memory_space<vmem>>, %arg9: memref<8x1xf32, #tpu.memory_space<vmem>>, %arg10: memref<8x16xf32, #tpu.memory_space<vmem>>, %arg11: memref<8x16xf32, #tpu.memory_space<vmem>>) attributes {dimension_semantics = [#tpu.dimension_semantics<parallel>, #tpu.dimension_semantics<arbitrary>], iteration_bounds = array<i64: 2, 2>, scalar_prefetch = 0 : i64, scratch_operands = 2 : i64, tpu.core_type = #tpu.core_type<tc>, window_params = [{transform_indices = @transform_0, window_bounds = array<i64: 8, 16, 16>}, {transform_indices = @transform_1, window_bounds = array<i64: 8, 16, 16>}, {pipeline_mode = #tpu.pipeline_mode<synchronous>, transform_indices = @transform_2, window_bounds = array<i64: 16, 32>}, {pipeline_mode = #tpu.pipeline_mode<synchronous>, transform_indices = @transform_3, window_bounds = array<i64: 16, 32>}, {pipeline_mode = #tpu.pipeline_mode<synchronous>, transform_indices = @transform_4, window_bounds = array<i64: 1, 32>}, {pipeline_mode = #tpu.pipeline_mode<synchronous>, transform_indices = @transform_5, window_bounds = array<i64: 1, 32>}, {pipeline_mode = #tpu.pipeline_mode<synchronous>, transform_indices = @transform_6, window_bounds = array<i64: 1, 1>}, {transform_indices = @transform_7, window_bounds = array<i64: 8, 1>}]} {
    %c0_i32 = arith.constant 0 : i32
    %0 = arith.cmpi eq, %arg1, %c0_i32 : i32
    %1 = arith.extui %0 : i1 to i32
    %c0_i32_0 = arith.constant 0 : i32
    %2 = arith.cmpi ne, %1, %c0_i32_0 : i32
    scf.if %2 {
      %cst_16 = arith.constant 0xFF800000 : f32
      %18 = vector.broadcast %cst_16 : f32 to vector<8x16xf32>
      %c0_17 = arith.constant 0 : index
      %c0_18 = arith.constant 0 : index
      %19 = vector.load %arg10[%c0_17, %c0_18] : memref<8x16xf32, #tpu.memory_space<vmem>>, vector<8x16xf32>
      tpu.vector_store %arg10[%c0_17, %c0_18], %18 {strides = array<i32>} : memref<8x16xf32, #tpu.memory_space<vmem>>, vector<8x16xf32>,
      %cst_19 = arith.constant 0xFF800000 : f32
      %20 = vector.broadcast %cst_19 : f32 to vector<8x16xf32>
      %c0_20 = arith.constant 0 : index
      %c0_21 = arith.constant 0 : index
      %21 = vector.load %arg11[%c0_20, %c0_21] : memref<8x16xf32, #tpu.memory_space<vmem>>, vector<8x16xf32>
      tpu.vector_store %arg11[%c0_20, %c0_21], %20 {strides = array<i32>} : memref<8x16xf32, #tpu.memory_space<vmem>>, vector<8x16xf32>,
    } else {
    }
    %c0 = arith.constant 0 : index
    %c0_1 = arith.constant 0 : index
    %3 = vector.load %arg10[%c0, %c0_1] : memref<8x16xf32, #tpu.memory_space<vmem>>, vector<8x16xf32>
    %c0_2 = arith.constant 0 : index
    %c0_3 = arith.constant 0 : index
    %c0_4 = arith.constant 0 : index
    %4 = vector.load %arg2[%c0_2, %c0_3, %c0_4] : memref<8x16x16xbf16, #tpu.memory_space<vmem>>, vector<8x16x16xbf16>
    %5 = arith.extf %4 : vector<8x16x16xbf16> to vector<8x16x16xf32>
    %cst = arith.constant dense<0xFF800000> : vector<8x16xf32>
    %6 = vector.multi_reduction <maximumf>, %5, %cst [1] : vector<8x16x16xf32> to vector<8x16xf32>
    %7 = arith.maximumf %3, %6 : vector<8x16xf32>
    %c0_5 = arith.constant 0 : index
    %c0_6 = arith.constant 0 : index
    %8 = vector.load %arg10[%c0_5, %c0_6] : memref<8x16xf32, #tpu.memory_space<vmem>>, vector<8x16xf32>
    tpu.vector_store %arg10[%c0_5, %c0_6], %7 {strides = array<i32>} : memref<8x16xf32, #tpu.memory_space<vmem>>, vector<8x16xf32>,
    %c0_7 = arith.constant 0 : index
    %c0_8 = arith.constant 0 : index
    %9 = vector.load %arg11[%c0_7, %c0_8] : memref<8x16xf32, #tpu.memory_space<vmem>>, vector<8x16xf32>
    %c0_9 = arith.constant 0 : index
    %c0_10 = arith.constant 0 : index
    %c0_11 = arith.constant 0 : index
    %10 = vector.load %arg3[%c0_9, %c0_10, %c0_11] : memref<8x16x16xbf16, #tpu.memory_space<vmem>>, vector<8x16x16xbf16>
    %11 = arith.extf %10 : vector<8x16x16xbf16> to vector<8x16x16xf32>
    %cst_12 = arith.constant dense<0xFF800000> : vector<8x16xf32>
    %12 = vector.multi_reduction <maximumf>, %11, %cst_12 [1] : vector<8x16x16xf32> to vector<8x16xf32>
    %13 = arith.maximumf %9, %12 : vector<8x16xf32>
    %c0_13 = arith.constant 0 : index
    %c0_14 = arith.constant 0 : index
    %14 = vector.load %arg11[%c0_13, %c0_14] : memref<8x16xf32, #tpu.memory_space<vmem>>, vector<8x16xf32>
    tpu.vector_store %arg11[%c0_13, %c0_14], %13 {strides = array<i32>} : memref<8x16xf32, #tpu.memory_space<vmem>>, vector<8x16xf32>,
    %c1_i32 = arith.constant 1 : i32
    %15 = arith.cmpi eq, %arg1, %c1_i32 : i32
    %16 = arith.extui %15 : i1 to i32
    %c0_i32_15 = arith.constant 0 : i32
    %17 = arith.cmpi ne, %16, %c0_i32_15 : i32
    scf.if %17 {
      %c0_16 = arith.constant 0 : index
      %c0_17 = arith.constant 0 : index
      %18 = vector.load %arg10[%c0_16, %c0_17] : memref<8x16xf32, #tpu.memory_space<vmem>>, vector<8x16xf32>
      %c0_18 = arith.constant 0 : index
      %c0_19 = arith.constant 0 : index
      %19 = vector.load %arg4[%c0_18, %c0_19] : memref<16x32xf32, #tpu.memory_space<vmem>>, vector<16x32xf32>
      %cst_20 = arith.constant dense<0.000000e+00> : vector<8x32xf32>
      %20 = tpu.matmul %18, %19, %cst_20 {dimension_numbers = #tpu.dot_dimension_numbers<[1], [0], [0], [1], [0, 0, 1, 1], [], []>} : vector<8x16xf32>, vector<16x32xf32>, vector<8x32xf32> -> vector<8x32xf32>
      %c0_21 = arith.constant 0 : index
      %c0_22 = arith.constant 0 : index
      %21 = vector.load %arg11[%c0_21, %c0_22] : memref<8x16xf32, #tpu.memory_space<vmem>>, vector<8x16xf32>
      %c0_23 = arith.constant 0 : index
      %c0_24 = arith.constant 0 : index
      %22 = vector.load %arg5[%c0_23, %c0_24] : memref<16x32xf32, #tpu.memory_space<vmem>>, vector<16x32xf32>
      %cst_25 = arith.constant dense<0.000000e+00> : vector<8x32xf32>
      %23 = tpu.matmul %21, %22, %cst_25 {dimension_numbers = #tpu.dot_dimension_numbers<[1], [0], [0], [1], [0, 0, 1, 1], [], []>} : vector<8x16xf32>, vector<16x32xf32>, vector<8x32xf32> -> vector<8x32xf32>
      %24 = arith.addf %20, %23 : vector<8x32xf32>
      %c0_26 = arith.constant 0 : index
      %c0_27 = arith.constant 0 : index
      %25 = vector.load %arg6[%c0_26, %c0_27] : memref<1x32xf32, #tpu.memory_space<vmem>>, vector<1x32xf32>
      %26 = vector.broadcast %25 : vector<1x32xf32> to vector<8x32xf32>
      %27 = arith.addf %24, %26 : vector<8x32xf32>
      %cst_28 = arith.constant 0.000000e+00 : f32
      %28 = vector.broadcast %cst_28 : f32 to vector<8x32xf32>
      %29 = arith.maximumf %27, %28 : vector<8x32xf32>
      %c0_29 = arith.constant 0 : index
      %c0_30 = arith.constant 0 : index
      %30 = vector.load %arg7[%c0_29, %c0_30] : memref<1x32xf32, #tpu.memory_space<vmem>>, vector<1x32xf32>
      %31 = vector.broadcast %30 : vector<1x32xf32> to vector<8x32xf32>
      %32 = arith.mulf %29, %31 : vector<8x32xf32>
      %cst_31 = arith.constant dense<0.000000e+00> : vector<8xf32>
      %33 = vector.multi_reduction <add>, %32, %cst_31 [1] : vector<8x32xf32> to vector<8xf32>
      %34 = vector.shape_cast %33 : vector<8xf32> to vector<8x1xf32>
      %c0_32 = arith.constant 0 : index
      %c0_33 = arith.constant 0 : index
      %35 = vector.load %arg8[%c0_32, %c0_33] : memref<1x1xf32, #tpu.memory_space<vmem>>, vector<1x1xf32>
      %36 = vector.broadcast %35 : vector<1x1xf32> to vector<8x1xf32>
      %37 = arith.addf %34, %36 : vector<8x1xf32>
      %38 = arith.negf %37 : vector<8x1xf32>
      %39 = math.exp %38 : vector<8x1xf32>
      %cst_34 = arith.constant 1.000000e+00 : f32
      %40 = vector.broadcast %cst_34 : f32 to vector<8x1xf32>
      %41 = arith.addf %40, %39 : vector<8x1xf32>
      %42 = arith.divf %40, %41 : vector<8x1xf32>
      %c0_35 = arith.constant 0 : index
      %c0_36 = arith.constant 0 : index
      %43 = vector.load %arg9[%c0_35, %c0_36] : memref<8x1xf32, #tpu.memory_space<vmem>>, vector<8x1xf32>
      tpu.vector_store %arg9[%c0_35, %c0_36], %42 {strides = array<i32>} : memref<8x1xf32, #tpu.memory_space<vmem>>, vector<8x1xf32>,
    } else {
    }
    return
  }
  func.func @transform_0(%arg0: i32, %arg1: i32) -> (i32, i32, i32) {
    %c0_i32 = arith.constant 0 : i32
    %c0_i32_0 = arith.constant 0 : i32
    return %arg0, %arg1, %c0_i32 : i32, i32, i32
  }
  func.func @transform_1(%arg0: i32, %arg1: i32) -> (i32, i32, i32) {
    %c0_i32 = arith.constant 0 : i32
    %c0_i32_0 = arith.constant 0 : i32
    return %arg0, %arg1, %c0_i32 : i32, i32, i32
  }
  func.func @transform_2(%arg0: i32, %arg1: i32) -> (i32, i32) {
    %c0_i32 = arith.constant 0 : i32
    %c0_i32_0 = arith.constant 0 : i32
    %c0_i32_1 = arith.constant 0 : i32
    return %c0_i32, %c0_i32_0 : i32, i32
  }
  func.func @transform_3(%arg0: i32, %arg1: i32) -> (i32, i32) {
    %c0_i32 = arith.constant 0 : i32
    %c0_i32_0 = arith.constant 0 : i32
    %c0_i32_1 = arith.constant 0 : i32
    return %c0_i32, %c0_i32_0 : i32, i32
  }
  func.func @transform_4(%arg0: i32, %arg1: i32) -> (i32, i32) {
    %c0_i32 = arith.constant 0 : i32
    %c0_i32_0 = arith.constant 0 : i32
    %c0_i32_1 = arith.constant 0 : i32
    return %c0_i32, %c0_i32_0 : i32, i32
  }
  func.func @transform_5(%arg0: i32, %arg1: i32) -> (i32, i32) {
    %c0_i32 = arith.constant 0 : i32
    %c0_i32_0 = arith.constant 0 : i32
    %c0_i32_1 = arith.constant 0 : i32
    return %c0_i32, %c0_i32_0 : i32, i32
  }
  func.func @transform_6(%arg0: i32, %arg1: i32) -> (i32, i32) {
    %c0_i32 = arith.constant 0 : i32
    %c0_i32_0 = arith.constant 0 : i32
    %c0_i32_1 = arith.constant 0 : i32
    return %c0_i32, %c0_i32_0 : i32, i32
  }
  func.func @transform_7(%arg0: i32, %arg1: i32) -> (i32, i32) {
    %c0_i32 = arith.constant 0 : i32
    %c0_i32_0 = arith.constant 0 : i32
    return %arg0, %c0_i32 : i32, i32
  }
}

</mosaic_0001>

<bundles_post_ra>
// kernel: tpu_custom_call.1
= control target key start
LH: loop header
LB: loop body
LE: loop exit
PB: predicated region body
PF: predicated region fallthrough
CT: control target
= control target key end

     0   :  { %s1564_s0 = inlined_call_operand.vmem [shape: bf16[16,32,16], index: 0, kind: input, shape index: {}]   ;;  %s1565_s1 = inlined_call_operand.vmem [shape: bf16[16,32,16], index: 1, kind: input, shape index: {}]   ;;  %s1566_s2 = inlined_call_operand.vmem [shape: f32[16,32], index: 2, kind: input, shape index: {}]   ;;  %s1567_s3 = inlined_call_operand.vmem [shape: f32[16,32], index: 3, kind: input, shape index: {}]   ;;  %s1568_s4 = inlined_call_operand.vmem [shape: f32[1,32], index: 4, kind: input, shape index: {}]   ;;  %s1569_s5 = inlined_call_operand.vmem [shape: f32[1,32], index: 5, kind: input, shape index: {}]   ;;  %s1570_s6 = inlined_call_operand.<no memory space> [shape: f32[1,1], index: 6, kind: input, shape index: {}]   ;;  %s1571_s7 = inlined_call_operand.vmem [shape: f32[16,1], index: 7, kind: output, shape index: {}]  }
   0x1   :  { %v12_v0 = vstv %s1570_s6 }
   0x2   :  { %13 = vst [vmem:[#allocation4] sm:$0x1] %v12_v0 }
   0x3   :  { %s1378_s26 = smov 0   ;;  %s1380_s27 = smov 0  }
   0x4   :  { %s1382_s28 = smov 0   ;;  %s1384_s29 = smov 0  }
   0x5   :  { %s1386_s30 = smov 0   ;;  %s1388_s8 = smov 0  }
   0x6   :  { %s1390_s9 = smov 0  }
   0x7 LB: > { %s28_s6 = sadd.s32 1, %s1321_s30  ;;  %s31_s10 = sadd.s32 1, %s1325_s8  ;;  %s1329_s9 = sphi %s1390_s9, %s19_s9   ;;  %s1325_s8 = sphi %s1388_s8, %s1578_s8   ;;  %s1321_s30 = sphi %s1386_s30, %s1577_s30   ;;  %s1317_s29 = sphi %s1384_s29, %s1576_s29   ;;  %s1313_s28 = sphi %s1382_s28, %s1575_s28   ;;  %s1309_s27 = sphi %s1380_s27, %s1574_s27   ;;  %s1305_s26 = sphi %s1378_s26, %s1573_s26  }
   0x8   : > { %p29_p0 = scmp.ge.s32.totalorder %s28_s6, 2  ;;  %p47_p1 = scmp.ne.s32.totalorder %s1309_s27, %s1305_s26 }
   0x9   : > { %p48_p2 = scmp.eq.s32.totalorder %s1329_s9, 0  ;;  %s40_s15 = sadd.s32 1, %s1309_s27 }
   0xa   : > { %s1580_s6 = smov (%p29_p0, %s28_s6), 0  ;;  %s1582_s10 = smov (!%p29_p0, %s31_s10), %s1325_s8 }
   0xb   : > { %p1421_p3 = por %p48_p2, %p47_p1  ;;  %p33_p4 = scmp.ge.s32.totalorder %s1582_s10, 2 }
   0xc   : > { %s36_s12 = ssub.s32 %s1321_s30, %s1580_s6  ;;  %p1080_p6 = scmp.ge.s32.totalorder %s1329_s9, 4 }
   0xd   : > { %s1584_s10 = smov (%p33_p4, %s1582_s10), 0 }
   0xe   : > { %s35_s13 = ssub.s32 %s1325_s8, %s1584_s10  ;;  %247 = sbr.rel (%p1080_p6) target bundleno = 43 (0x2b), region = 36 }
   0xf   : > { %s37_s14 = sor.u32 %s36_s12, %s35_s13 }
  0x10   : > { %p38_p5 = scmp.eq.s32.totalorder %s37_s14, 0 }
  0x12   : > { %s1433_s16 = scalar_select %p38_p5, %s1309_s27, %s40_s15  }
  0x15   : > { %250 = sbr.rel (!%p1421_p3) target bundleno = 32 (0x20), region = 40  ;;  %s252_s17 = sand.u32 (%p1421_p3), 1, %s1309_s27  }
  0x16   : > { %s1083_s18 = sshll.u32 (%p1421_p3), %s1321_s30, 1  ;;  %s1081_s19 = sshll.u32 (%p1421_p3), %s252_s17, 6 }
  0x17   : > { %s1105_s20 = sshll.u32 (%p1421_p3), %s1325_s8, 5  ;;  %s254_s12 = scalar_lea.vmem (%p1421_p3), [#allocation5], %s1081_s19 }
  0x18   : > { %s258_s21 = sadd.s32 (%p1421_p3), %s1105_s20, %s1083_s18 }
  0x19   : > { %s1085_s22 = sshll.u32 (%p1421_p3), %s258_s21, 2 }
  0x1a   : > { %s260_s25 = scalar_lea.vmem (%p1421_p3), %s1564_s0, %s1085_s22 }
  0x1b   : > { %v276_v1 = vld [vmem:[%s260_s25] sm:$0xff] (%p1421_p3)   ;;  %v280_v2 = vld [vmem:[%s260_s25 + $0x10] sm:$0xff] (%p1421_p3)  }
  0x1c   : > { %v284_v3 = vld [vmem:[%s260_s25 + $0x20] sm:$0xff]   ;;  %277 = vst [vmem:[%s254_s12] sm:$0xff] %v276_v1   ;;  %281 = vst [vmem:[%s254_s12 + $0x8] sm:$0xff] %v280_v2   ;;  %v288_v4 = vld [vmem:[%s260_s25 + $0x30] sm:$0xff]  }
  0x1d   : > { %285 = vst [vmem:[%s254_s12 + $0x10] sm:$0xff] %v284_v3   ;;  %v292_v5 = vld [vmem:[%s260_s25 + $0x40] sm:$0xff]   ;;  %v296_v6 = vld [vmem:[%s260_s25 + $0x50] sm:$0xff]   ;;  %289 = vst [vmem:[%s254_s12 + $0x18] sm:$0xff] %v288_v4  }
  0x1e   : > { %293 = vst [vmem:[%s254_s12 + $0x20] sm:$0xff] %v292_v5   ;;  %297 = vst [vmem:[%s254_s12 + $0x28] sm:$0xff] %v296_v6   ;;  %v300_v7 = vld [vmem:[%s260_s25 + $0x60] sm:$0xff]   ;;  %v304_v8 = vld [vmem:[%s260_s25 + $0x70] sm:$0xff]  }
  0x1f   : > { %301 = vst [vmem:[%s254_s12 + $0x30] sm:$0xff] %v300_v7   ;;  %305 = vst [vmem:[%s254_s12 + $0x38] sm:$0xff] %v304_v8  }
  0x20 PF: > { %362 = sbr.rel (!%p1421_p3) target bundleno = 43 (0x2b), region = 81  ;;  %s364_s13 = sand.u32 (%p1421_p3), 1, %s1309_s27  }
  0x21   : > { %s1088_s14 = sshll.u32 (%p1421_p3), %s1321_s30, 1  ;;  %s1086_s15 = sshll.u32 (%p1421_p3), %s364_s13, 6 }
  0x22   : > { %s1106_s17 = sshll.u32 (%p1421_p3), %s1325_s8, 5  ;;  %s366_s23 = scalar_lea.vmem (%p1421_p3), [#allocation6], %s1086_s15 }
  0x23   : > { %s370_s18 = sadd.s32 (%p1421_p3), %s1106_s17, %s1088_s14 }
  0x24   : > { %s1090_s19 = sshll.u32 (%p1421_p3), %s370_s18, 2 }
  0x25   : > { %s372_s22 = scalar_lea.vmem (%p1421_p3), %s1565_s1, %s1090_s19 }
  0x26   : > { %v388_v9 = vld [vmem:[%s372_s22] sm:$0xff] (%p1421_p3)   ;;  %v392_v10 = vld [vmem:[%s372_s22 + $0x10] sm:$0xff] (%p1421_p3)  }
  0x27   : > { %v396_v11 = vld [vmem:[%s372_s22 + $0x20] sm:$0xff]   ;;  %389 = vst [vmem:[%s366_s23] sm:$0xff] %v388_v9   ;;  %393 = vst [vmem:[%s366_s23 + $0x8] sm:$0xff] %v392_v10   ;;  %v400_v12 = vld [vmem:[%s372_s22 + $0x30] sm:$0xff]  }
  0x28   : > { %397 = vst [vmem:[%s366_s23 + $0x10] sm:$0xff] %v396_v11   ;;  %v404_v13 = vld [vmem:[%s372_s22 + $0x40] sm:$0xff]   ;;  %v408_v14 = vld [vmem:[%s372_s22 + $0x50] sm:$0xff]   ;;  %401 = vst [vmem:[%s366_s23 + $0x18] sm:$0xff] %v400_v12  }
  0x29   : > { %405 = vst [vmem:[%s366_s23 + $0x20] sm:$0xff] %v404_v13   ;;  %409 = vst [vmem:[%s366_s23 + $0x28] sm:$0xff] %v408_v14   ;;  %v412_v15 = vld [vmem:[%s372_s22 + $0x60] sm:$0xff]   ;;  %v416_v16 = vld [vmem:[%s372_s22 + $0x70] sm:$0xff]  }
  0x2a   : > { %413 = vst [vmem:[%s366_s23 + $0x30] sm:$0xff] %v412_v15   ;;  %417 = vst [vmem:[%s366_s23 + $0x38] sm:$0xff] %v416_v16  }
  0x2b PF: > { %p1091_p7 = scmp.ge.s32.totalorder %s1329_s9, 1  ;;  %p473_p8 = scmp.lt.s32.totalorder %s1329_s9, 5 }
  0x2d   : > { %p474_p9 = pnand %p1091_p7, %p473_p8 }
  0x2e   : > { %s480_s11 = sand.u32 (!%p474_p9), 1, %s1305_s26   ;;  %p525_p10 = scmp.lt.s32.totalorder (!%p474_p9), %s1317_s29, 1 }
  0x2f   : > { %477 = sbr.rel (%p474_p9) target bundleno = 520 (0x208), region = 122  ;;  %s1092_s24 = sshll.u32 (!%p474_p9), %s480_s11, 6 }
  0x30   : > { %s482_s15 = scalar_lea.vmem (!%p474_p9), [#allocation5], %s1092_s24  ;;  %s1462_s17 = scalar_lea.vmem (!%p474_p9), [#allocation6], %s1092_s24 }
  0x31   : > { %p1095_p11 = scmp.ne.s32.totalorder (!%p474_p9), %s1313_s28, 0 }
  0x36   : > { %s1586_s29 = smov (!%p525_p10, %s1317_s29), 1  ;;  %532 = sbr.rel (%p1095_p11) target bundleno = 61 (0x3d), region = 134 }
  0x37   : > { %s1094_s25 = sshll.u32 %s1586_s29, 3  ;;  %vm533_vm0 = vcmask (!%p1095_p11), 130048   ;;  %v1331_v17 = vmov (!%p1095_p11), -inf  }
  0x38   : > { %s1460_s14 = scalar_lea.vmem %s1571_s7, %s1094_s25  ;;  %534 = vst.msk [vmem:[#allocation2] sm:$0xff] (!%p1095_p11), %vm533_vm0, %v1331_v17  ;;  %535 = vst.msk [vmem:[#allocation3] sm:$0xff] (!%p1095_p11), %vm533_vm0, %v1331_v17 }
  0x3d PF: > { %v1108_v18 = vld [vmem:[%s482_s15] sm:$0xff]   ;;  %v1171_v19 = vld [vmem:[%s482_s15 + $0x8] sm:$0xff]   ;;  %vm569_vm1 = vcmask 130048   ;;  %v1172_v24 = vld [vmem:[%s482_s15 + $0x10] sm:$0xff]   ;;  %vm650_vm2 = vcmask 1041409   ;;  %vm652_vm3 = vcmask 1042434  }
  0x3e   : > { %v1109_v20 = vunpack.c.l.bf16 %v1108_v18  ;;  %v1110_v21 = vunpack.c.h.bf16 %v1108_v18  ;;  %v1113_v22 = vunpack.c.l.bf16 %v1171_v19  ;;  %v1114_v23 = vunpack.c.h.bf16 %v1171_v19  ;;  %v1173_v25 = vld [vmem:[%s482_s15 + $0x18] sm:$0xff]   ;;  %v1174_v26 = vld [vmem:[%s482_s15 + $0x20] sm:$0xff]   ;;  %v1175_v31 = vld [vmem:[%s482_s15 + $0x28] sm:$0xff]   ;;  %p1096_p12 = scmp.ne.s32.totalorder %s1313_s28, 1 }
  0x3f   : > { %v1117_v27 = vunpack.c.l.bf16 %v1172_v24  ;;  %v1118_v28 = vunpack.c.h.bf16 %v1172_v24  ;;  %v1121_v29 = vunpack.c.l.bf16 %v1173_v25  ;;  %v1122_v30 = vunpack.c.h.bf16 %v1173_v25  ;;  %v1176_v32 = vld [vmem:[%s482_s15 + $0x30] sm:$0xff]   ;;  %v1177_v33 = vld [vmem:[%s482_s15 + $0x38] sm:$0xff]  }
  0x40   : > { %v1125_v34 = vunpack.c.l.bf16 %v1174_v26  ;;  %v1126_v35 = vunpack.c.h.bf16 %v1174_v26  ;;  %v1129_v36 = vunpack.c.l.bf16 %v1175_v31  ;;  %v1130_v37 = vunpack.c.h.bf16 %v1175_v31 }
  0x41   : > { %v1133_v38 = vunpack.c.l.bf16 %v1176_v32  ;;  %v1134_v39 = vunpack.c.h.bf16 %v1176_v32  ;;  %v1137_v40 = vunpack.c.l.bf16 %v1177_v33  ;;  %v1138_v41 = vunpack.c.h.bf16 %v1177_v33 }
  0x42   : > { %v570_v42 = vsel %vm569_vm1, %v1109_v20, -inf  ;;  %v571_v43 = vsel %vm569_vm1, %v1110_v21, -inf  ;;  %v579_v44 = vsel %vm569_vm1, %v1113_v22, -inf  ;;  %v580_v45 = vsel %vm569_vm1, %v1114_v23, -inf }
  0x43   : > { %v572_v46 = vmax.f32 %v570_v42, %v571_v43  ;;  %v581_v47 = vmax.f32 %v579_v44, %v580_v45  ;;  %v588_v48 = vsel %vm569_vm1, %v1117_v27, -inf  ;;  %v589_v49 = vsel %vm569_vm1, %v1118_v28, -inf  ;;  %v1140_v45 = vld [vmem:[%s1462_s17] sm:$0xff]  }
  0x44   : > { %v590_v50 = vmax.f32 %v588_v48, %v589_v49  ;;  %v597_v51 = vsel %vm569_vm1, %v1121_v29, -inf  ;;  %v598_v52 = vsel %vm569_vm1, %v1122_v30, -inf  ;;  %v606_v53 = vsel %vm569_vm1, %v1125_v34, -inf  ;;  %v1178_v48 = vld [vmem:[%s1462_s17 + $0x8] sm:$0xff]  }
  0x45   : > { %v573_v54 = vrot.slane %v572_v46, 4  ;;  %v582_v55 = vrot.slane %v581_v47, 4  ;;  %v599_v56 = vmax.f32 %v597_v51, %v598_v52  ;;  %v607_v57 = vsel %vm569_vm1, %v1126_v35, -inf  ;;  %v1179_v52 = vld [vmem:[%s1462_s17 + $0x10] sm:$0xff]  }
  0x46   : > { %v591_v58 = vrot.slane %v590_v50, 4  ;;  %v608_v59 = vmax.f32 %v606_v53, %v607_v57  ;;  %v615_v60 = vsel %vm569_vm1, %v1129_v36, -inf  ;;  %v616_v61 = vsel %vm569_vm1, %v1130_v37, -inf  ;;  %v1180_v53 = vld [vmem:[%s1462_s17 + $0x18] sm:$0xff]   ;;  %v1181_v57 = vld [vmem:[%s1462_s17 + $0x20] sm:$0xff]  }
  0x47   : > { %v574_v62 = vmax.f32 %v572_v46, %v573_v54  ;;  %v583_v63 = vmax.f32 %v581_v47, %v582_v55  ;;  %v600_v0 = vrot.slane %v599_v56, 4  ;;  %v617_v1 = vmax.f32 %v615_v60, %v616_v61 }
  0x48   : > { %v592_v2 = vmax.f32 %v590_v50, %v591_v58  ;;  %v609_v3 = vrot.slane %v608_v59, 4  ;;  %v624_v4 = vsel %vm569_vm1, %v1133_v38, -inf  ;;  %v625_v5 = vsel %vm569_vm1, %v1134_v39, -inf }
  0x49   : > { %v575_v6 = vrot.slane %v574_v62, 2  ;;  %v584_v7 = vrot.slane %v583_v63, 2  ;;  %v601_v8 = vmax.f32 %v599_v56, %v600_v0  ;;  %v618_v9 = vrot.slane %v617_v1, 4 }
  0x4a   : > { %v593_v10 = vrot.slane %v592_v2, 2  ;;  %v610_v11 = vmax.f32 %v608_v59, %v609_v3  ;;  %v626_v12 = vmax.f32 %v624_v4, %v625_v5  ;;  %v633_v13 = vsel %vm569_vm1, %v1137_v40, -inf  ;;  %v1184_v4 = vld [vmem:[%s1462_s17 + $0x38] sm:$0xff]  }
  0x4b   : > { %v576_v14 = vmax.f32 %v574_v62, %v575_v6  ;;  %v585_v15 = vmax.f32 %v583_v63, %v584_v7  ;;  %v602_v16 = vrot.slane %v601_v8, 2  ;;  %v619_v17 = vmax.f32 %v617_v1, %v618_v9  ;;  %v1182_v62 = vld [vmem:[%s1462_s17 + $0x28] sm:$0xff]   ;;  %v1183_v63 = vld [vmem:[%s1462_s17 + $0x30] sm:$0xff]  }
  0x4c   : > { %v594_v18 = vmax.f32 %v592_v2, %v593_v10  ;;  %v611_v19 = vrot.slane %v610_v11, 2  ;;  %v627_v20 = vrot.slane %v626_v12, 4  ;;  %v634_v21 = vsel %vm569_vm1, %v1138_v41, -inf }
  0x4d   : > { %v577_v22 = vrot.slane %v576_v14, 1  ;;  %v586_v23 = vrot.slane %v585_v15, 1  ;;  %v603_v24 = vmax.f32 %v601_v8, %v602_v16  ;;  %v620_v25 = vrot.slane %v619_v17, 2 }
  0x4e   : > { %v595_v26 = vrot.slane %v594_v18, 1  ;;  %v612_v27 = vmax.f32 %v610_v11, %v611_v19  ;;  %v628_v28 = vmax.f32 %v626_v12, %v627_v20  ;;  %v635_v29 = vmax.f32 %v633_v13, %v634_v21  ;;  %v536_v13 = vld [vmem:[#allocation2] sm:$0xff] }
  0x4f   : > { %v578_v30 = vmax.f32 %v576_v14, %v577_v22  ;;  %v587_v31 = vmax.f32 %v585_v15, %v586_v23  ;;  %v604_v32 = vrot.slane %v603_v24, 1  ;;  %v621_v33 = vmax.f32 %v619_v17, %v620_v25 }
  0x50   : > { %v596_v34 = vmax.f32 %v594_v18, %v595_v26  ;;  %v613_v35 = vrot.slane %v612_v27, 1  ;;  %v629_v36 = vrot.slane %v628_v28, 2  ;;  %v636_v37 = vrot.slane %v635_v29, 4 }
  0x51   : > { %v605_v38 = vmax.f32 %v603_v24, %v604_v32  ;;  %v622_v39 = vrot.slane %v621_v33, 1  ;;  %v651_v40 = vsel %vm650_vm2, %v587_v31, %v578_v30  ;;  %vm654_vm4 = vcmask 1043459  }
  0x52   : > { %v614_v41 = vmax.f32 %v612_v27, %v613_v35  ;;  %v630_v42 = vmax.f32 %v628_v28, %v629_v36  ;;  %v637_v43 = vmax.f32 %v635_v29, %v636_v37  ;;  %v653_v44 = vsel %vm652_vm3, %v596_v34, %v651_v40 }
  0x53   : > { %v623_v46 = vmax.f32 %v621_v33, %v622_v39  ;;  %v655_v47 = vsel %vm654_vm4, %v605_v38, %v653_v44  ;;  %vm656_vm5 = vcmask 1044484   ;;  %vm658_vm6 = vcmask 1045509  }
  0x54   : > { %v631_v49 = vrot.slane %v630_v42, 1  ;;  %v638_v50 = vrot.slane %v637_v43, 2  ;;  %v657_v51 = vsel %vm656_vm5, %v614_v41, %v655_v47  ;;  %vm660_vm7 = vcmask 1046534  }
  0x55   : > { %v659_v54 = vsel %vm658_vm6, %v623_v46, %v657_v51  ;;  %vm662_vm8 = vcmask 1047559   ;;  %v1141_v55 = vunpack.c.l.bf16 %v1140_v45  ;;  %v1142_v56 = vunpack.c.h.bf16 %v1140_v45 }
  0x56   : > { %v632_v58 = vmax.f32 %v630_v42, %v631_v49  ;;  %v639_v59 = vmax.f32 %v637_v43, %v638_v50  ;;  %v1145_v60 = vunpack.c.l.bf16 %v1178_v48  ;;  %v1146_v61 = vunpack.c.h.bf16 %v1178_v48 }
  0x57   : > { %v1149_v0 = vunpack.c.l.bf16 %v1179_v52  ;;  %v1150_v1 = vunpack.c.h.bf16 %v1179_v52  ;;  %v1153_v2 = vunpack.c.l.bf16 %v1180_v53  ;;  %v1154_v3 = vunpack.c.h.bf16 %v1180_v53 }
  0x58   : > { %v640_v5 = vrot.slane %v639_v59, 1  ;;  %v661_v6 = vsel %vm660_vm7, %v632_v58, %v659_v54  ;;  %v1157_v7 = vunpack.c.l.bf16 %v1181_v57  ;;  %v1158_v8 = vunpack.c.h.bf16 %v1181_v57 }
  0x59   : > { %v1161_v9 = vunpack.c.l.bf16 %v1182_v62  ;;  %v1162_v10 = vunpack.c.h.bf16 %v1182_v62  ;;  %v1165_v11 = vunpack.c.l.bf16 %v1183_v63  ;;  %v1166_v12 = vunpack.c.h.bf16 %v1183_v63 }
  0x5a   : > { %v641_v14 = vmax.f32 %v639_v59, %v640_v5  ;;  %v1169_v15 = vunpack.c.l.bf16 %v1184_v4  ;;  %v1170_v16 = vunpack.c.h.bf16 %v1184_v4  ;;  %v700_v17 = vsel %vm569_vm1, %v1141_v55, -inf }
  0x5b   : > { %v701_v18 = vsel %vm569_vm1, %v1142_v56, -inf  ;;  %v709_v19 = vsel %vm569_vm1, %v1145_v60, -inf  ;;  %v710_v20 = vsel %vm569_vm1, %v1146_v61, -inf  ;;  %v718_v21 = vsel %vm569_vm1, %v1149_v0, -inf }
  0x5c   : > { %v663_v22 = vsel %vm662_vm8, %v641_v14, %v661_v6  ;;  %v702_v23 = vmax.f32 %v700_v17, %v701_v18  ;;  %v711_v24 = vmax.f32 %v709_v19, %v710_v20  ;;  %v719_v25 = vsel %vm569_vm1, %v1150_v1, -inf }
  0x5d   : > { %v665_v26 = vmax.f32 %v536_v13, %v663_v22  ;;  %v720_v27 = vmax.f32 %v718_v21, %v719_v25  ;;  %v727_v28 = vsel %vm569_vm1, %v1153_v2, -inf  ;;  %v728_v29 = vsel %vm569_vm1, %v1154_v3, -inf }
  0x5e   : > { %v703_v30 = vrot.slane %v702_v23, 4  ;;  %v712_v31 = vrot.slane %v711_v24, 4  ;;  %v729_v32 = vmax.f32 %v727_v28, %v728_v29  ;;  %v736_v33 = vsel %vm569_vm1, %v1157_v7, -inf }
  0x5f   : > { %666 = vst.msk [vmem:[#allocation2] sm:$0xff] %vm569_vm1, %v665_v26  ;;  %v721_v34 = vrot.slane %v720_v27, 4  ;;  %v737_v35 = vsel %vm569_vm1, %v1158_v8, -inf  ;;  %v745_v36 = vsel %vm569_vm1, %v1161_v9, -inf  ;;  %v746_v37 = vsel %vm569_vm1, %v1162_v10, -inf }
  0x60   : > { %v704_v38 = vmax.f32 %v702_v23, %v703_v30  ;;  %v713_v39 = vmax.f32 %v711_v24, %v712_v31  ;;  %v730_v40 = vrot.slane %v729_v32, 4  ;;  %v738_v41 = vmax.f32 %v736_v33, %v737_v35 }
  0x61   : > { %v722_v42 = vmax.f32 %v720_v27, %v721_v34  ;;  %v747_v43 = vmax.f32 %v745_v36, %v746_v37  ;;  %v754_v44 = vsel %vm569_vm1, %v1165_v11, -inf  ;;  %v755_v45 = vsel %vm569_vm1, %v1166_v12, -inf  ;;  %v798_v36 = vld [vmem:[%s1567_s3] sm:$0xff] (!%p1096_p12)  ;;  %v799_v37 = vld [vmem:[%s1567_s3 + $0x8] sm:$0xff] (!%p1096_p12) }
  0x62   : > { %v705_v46 = vrot.slane %v704_v38, 2  ;;  %v714_v47 = vrot.slane %v713_v39, 2  ;;  %v731_v48 = vmax.f32 %v729_v32, %v730_v40  ;;  %v739_v49 = vrot.slane %v738_v41, 4  ;;  %v667_v32 = vld [vmem:[#allocation3] sm:$0xff] }
  0x63   : > { %v723_v50 = vrot.slane %v722_v42, 2  ;;  %v748_v51 = vrot.slane %v747_v43, 4  ;;  %v756_v52 = vmax.f32 %v754_v44, %v755_v45  ;;  %v763_v53 = vsel %vm569_vm1, %v1169_v15, -inf }
  0x64   : > { %v706_v54 = vmax.f32 %v704_v38, %v705_v46  ;;  %v715_v55 = vmax.f32 %v713_v39, %v714_v47  ;;  %v732_v56 = vrot.slane %v731_v48, 2  ;;  %v740_v57 = vmax.f32 %v738_v41, %v739_v49  ;;  %v795_v38 = vld [vmem:[%s1566_s2] sm:$0xff] (!%p1096_p12)  ;;  %v796_v41 = vld [vmem:[%s1566_s2 + $0x8] sm:$0xff] (!%p1096_p12) }
  0x65   : > { %v724_v58 = vmax.f32 %v722_v42, %v723_v50  ;;  %v749_v59 = vmax.f32 %v747_v43, %v748_v51  ;;  %v757_v60 = vrot.slane %v756_v52, 4  ;;  %v764_v61 = vsel %vm569_vm1, %v1170_v16, -inf }
  0x66   : > { %v707_v62 = vrot.slane %v706_v54, 1  ;;  %v716_v63 = vrot.slane %v715_v55, 1  ;;  %v733_v0 = vmax.f32 %v731_v48, %v732_v56  ;;  %v741_v1 = vrot.slane %v740_v57, 2  ;;  %v794_v45 = vld [vmem:[#allocation2] sm:$0xff] (!%p1096_p12) }
  0x67   : > { %v725_v2 = vrot.slane %v724_v58, 1  ;;  %v750_v3 = vrot.slane %v749_v59, 2  ;;  %v758_v4 = vmax.f32 %v756_v52, %v757_v60  ;;  %v765_v5 = vmax.f32 %v763_v53, %v764_v61  ;;  %v1099_v48 = vld [vmem:[%s1568_s4] ss:$0 sm:$0xff] (!%p1096_p12) }
  0x68   : > { %v708_v6 = vmax.f32 %v706_v54, %v707_v62  ;;  %v717_v7 = vmax.f32 %v715_v55, %v716_v63  ;;  %v734_v8 = vrot.slane %v733_v0, 1  ;;  %v742_v9 = vmax.f32 %v740_v57, %v741_v1  ;;  %v1100_v53 = vld [vmem:[%s1569_s5] ss:$0 sm:$0xff] (!%p1096_p12)  ;;  %v1101_v57 = vld [vmem:[#allocation4] ss:$0 sm:$0xff] (!%p1096_p12) }
  0x69   : > { %v726_v10 = vmax.f32 %v724_v58, %v725_v2  ;;  %v751_v11 = vmax.f32 %v749_v59, %v750_v3  ;;  %v759_v12 = vrot.slane %v758_v4, 2  ;;  %v766_v13 = vrot.slane %v765_v5, 4 }
  0x6a   : > { %v735_v14 = vmax.f32 %v733_v0, %v734_v8  ;;  %v743_v15 = vrot.slane %v742_v9, 1  ;;  %v780_v16 = vsel %vm650_vm2, %v717_v7, %v708_v6  ;;  %v1332_v39 = vmov (!%p1096_p12), 0.0|0.0  }
  0x6b   : > { %v752_v17 = vrot.slane %v751_v11, 1  ;;  %v760_v18 = vmax.f32 %v758_v4, %v759_v12  ;;  %v767_v19 = vmax.f32 %v765_v5, %v766_v13  ;;  %v781_v20 = vsel %vm652_vm3, %v726_v10, %v780_v16  ;;  %1205 = vmatprep.subr.bf16.mxu0 (!%p1096_p12), %v1332_v39  ;;  %1208 = vmatprep.subr.bf16.mxu1 (!%p1096_p12), %v1332_v39 }
  0x6c   : > { %v744_v21 = vmax.f32 %v742_v9, %v743_v15  ;;  %v782_v22 = vsel %vm654_vm4, %v735_v14, %v781_v20  ;;  %v1206_v40 = vpack.c.bf16 (!%p1096_p12), %v799_v37, %v798_v36  ;;  %v1209_v42 = vpack.c.bf16 (!%p1096_p12), %v796_v41, %v795_v38 }
  0x6d   : > { %v753_v23 = vmax.f32 %v751_v11, %v752_v17  ;;  %v761_v24 = vrot.slane %v760_v18, 1  ;;  %v768_v25 = vrot.slane %v767_v19, 2  ;;  %vm1333_vm9 = vmmov (!%p1096_p12), 0  }
  0x6e   : > { %v783_v26 = vsel %vm656_vm5, %v744_v21, %v782_v22  ;;  %v1334_v43 = vmov (!%p1096_p12), 0.0   ;;  %1207 = vmatpush3.bf16.msra.mxu0 (!%p1096_p12), %v1206_v40  ;;  %1210 = vmatpush3.bf16.msra.mxu1 (!%p1096_p12), %v1209_v42  ;;  %vm963_vm10 = vcmask (!%p1096_p12), 261120   ;;  %vm981_vm11 = vcmask (!%p1096_p12), 7168  }
  0x6f   : > { %v762_v27 = vmax.f32 %v760_v18, %v761_v24  ;;  %v769_v28 = vmax.f32 %v767_v19, %v768_v25  ;;  %v784_v29 = vsel %vm658_vm6, %v753_v23, %v783_v26  ;;  %1195 = vmatprep.mubr.msk.f32.mxu0 (!%p1096_p12), %vm1333_vm9, %v1334_v43  ;;  %1202 = vmatprep.mubr.msk.f32.mxu1 (!%p1096_p12), %vm1333_vm9, %v1334_v43 }
  0x71   : > { %v770_v30 = vrot.slane %v769_v28, 1  ;;  %v785_v31 = vsel %vm660_vm7, %v762_v27, %v784_v29  ;;  %1203 = vmatmul.mubr.msk.f32.vlgmr.msra.gmra.mrb[0].mxu1 (!%p1096_p12), %vm569_vm1, %v794_v45 }
  0x72   : > { %793 = sbr.rel (%p1096_p12) target bundleno = 520 (0x208), region = 138 }
  0x73   : > { %v771_v33 = vmax.f32 %v769_v28, %v770_v30 }
  0x75   : > { %v786_v34 = vsel %vm662_vm8, %v771_v33, %v785_v31 }
  0x76   : > { %v788_v35 = vmax.f32 %v667_v32, %v786_v34 }
  0x78   : > { %789 = vst.msk [vmem:[#allocation3] sm:$0xff] %vm569_vm1, %v788_v35 }
  0x7f   : > { %v797_v44 = vld [vmem:[#allocation3] sm:$0xff] }
  0x80   : > { %1196 = vmatmul.mubr.msk.f32.vlgmr.msra.gmra.mrb[0].mxu0 %vm569_vm1, %v797_v44 }
 0x144   : > { %v942_v47 = vpop.f32.mrb[0].mxu1 }
 0x145   : > { %v1204_v51 = vpop.f32.mrb[1].mxu1 }
 0x153   : > { %v869_v46 = vpop.f32.mrb[0].mxu0 }
 0x154   : > { %v1197_v49 = vpop.f32.mrb[1].mxu0  ;;  %v943_v50 = vadd.f32 %v942_v47, %v869_v46 }
 0x156   : > { %v953_v52 = vadd.f32 %v1099_v48, %v943_v50 }
 0x158   : > { %v954_v54 = vmax.f32 %v953_v52, 0.0 }
 0x15a   : > { %v962_v55 = vmul.f32 %v1100_v53, %v954_v54 }
 0x15c   : > { %v964_v56 = vsel %vm963_vm10, %v962_v55, 0.0 }
 0x15d   : > { %965 = vadd.xlane.f32.xlu0 %v964_v56 }
 0x1ea   : > { %v966_v58 = vpop.xlane.xlu0 %965 }
 0x1eb   : > { %v974_v59 = vadd.f32 %v1101_v57, %v966_v58 }
 0x1ed   : > { %v1102_v60 = vmul.f32 -1.442695, %v974_v59 }
 0x1ef   : > { %1271 = vpow2.f32 %v1102_v60 }
 0x1f9   : > { %v1272_v61 = vpop.eup %1271 }
 0x1fa   : > { %v978_v62 = vadd.f32 1.0, %v1272_v61 }
 0x1fc   : > { %1273 = vrcp.f32 %v978_v62 }
 0x206   : > { %v1274_v63 = vpop.eup %1273 }
 0x207   : > { %982 = vst.msk [vmem:[%s1460_s14] sm:$0xff] %vm981_vm11, %v1274_v63 }
 0x208 PF: > { %s19_s9 = sadd.s32 1, %s1329_s9   ;;  %s1573_s26 = smov %s1309_s27 }
 0x209   : > { %p16_p13 = scmp.ge.s32.totalorder %s19_s9, 6   ;;  %s1574_s27 = smov %s1433_s16 }
 0x20a   : > { %s1575_s28 = smov %s1321_s30  ;;  %s1576_s29 = smov %s1325_s8 }
 0x20b   : > { %s1577_s30 = smov %s1580_s6  ;;  %s1578_s8 = smov %s1584_s10 }
 0x20c   :  { %18 = sbr.rel (!%p16_p13) target bundleno = 7 (0x7), region = 181 }

</bundles_post_ra>
